<compile_context>
chip_gen: v5e
topology: v5e:2x2
jax: 0.10.0
libtpu: 0.0.40
codegen_flags: <defaults>
</compile_context>

<pallas_src>
import functools

import jax
import jax.numpy as jnp
from jax.experimental import pallas as pl
from jax.experimental.pallas import tpu as pltpu


def _layernorm_kernel(x_ref, scale_ref, shift_ref, o_ref, *, eps):
    x = x_ref[...].astype(jnp.float32)                      # (tile_rows, emb_dim)
    inv_n = 1.0 / x.shape[-1]
    # Two-pass centered statistics (matches torch.var(unbiased=False) and
    # avoids the E[x^2]-mean^2 cancellation when |mean| >> std).
    mean = jnp.sum(x, axis=-1, keepdims=True) * inv_n
    xc = x - mean
    var = jnp.sum(xc * xc, axis=-1, keepdims=True) * inv_n
    inv_std = jax.lax.rsqrt(var + eps)
    scale = scale_ref[...].astype(jnp.float32)              # (1, emb_dim)
    shift = shift_ref[...].astype(jnp.float32)              # (1, emb_dim)
    # NOTE: on a ragged last block the out-of-range rows contain undefined
    # data and flow through rsqrt; this is benign on TPU (no traps) and the
    # rows are masked out on store.  Do not "fix" with a branch.
    o_ref[...] = (xc * inv_std * scale + shift).astype(o_ref.dtype)


def _round_up(v, m):
    return (v + m - 1) // m * m


def _tpu_device_kind():
    try:
        return jax.devices()[0].device_kind.lower()
    except Exception:
        return ""


def _vmem_capacity_bytes():
    try:
        return int(pltpu.get_tpu_info().vmem_capacity_bytes)
    except Exception:
        # Device-kind-aware fallback: only v7x has 64 MiB/TC; v5e/v6e have
        # 128 MiB.  Defaulting to 64 MiB on a 128 MiB chip would silently
        # halve the tile size.
        if "v7" in _tpu_device_kind():
            return 64 * 1024 * 1024
        return 128 * 1024 * 1024


def _num_tensorcores():
    # v7x has 2 TensorCores per chip; v5e/v6e have 1.
    return 2 if "v7" in _tpu_device_kind() else 1


def _pick_tile_rows(rows, emb_dim, itemsize, vmem_cap, num_cores):
    """Largest row tile that fits the VMEM budget, with a core-aware block floor."""
    rows8 = _round_up(rows, 8)
    # Half of physical VMEM as budget; the rest is headroom for compiler
    # scratch and the scoped-VMEM limit below.
    budget = vmem_cap // 2
    # Per-row VMEM footprint:
    #   2x double-buffered input blocks + 2x double-buffered output blocks
    #   (itemsize each) + ~3 live f32 tile-sized temporaries in the body
    #   (x cast to f32, centered xc, normalized product).  Counting the f32
    #   temps matters for bf16 inputs, especially under v7x's 64 MiB VMEM.
    per_row = emb_dim * (4 * itemsize + 3 * 4)
    tile = (budget // max(per_row, 1)) // 8 * 8
    # Byte-based target instead of a hard row cap: ~16 MiB of input per block
    # is already deep in the ~85%-of-HBM-roofline regime; larger blocks only
    # add VMEM pressure and pipeline-fill latency.
    target_rows = max(8, ((16 * 1024 * 1024) // max(emb_dim * itemsize, 1)) // 8 * 8)
    tile = min(tile, target_rows, rows8)
    # Load-balance / pipeline floor: >= 2 blocks per TensorCore (2 steps on
    # single-TC v5e/v6e for double-buffer overlap, 4 on dual-TC v7x so the
    # "parallel" row axis shards).  No artificial ">= 8 steps" cap.
    min_blocks = 2 * num_cores
    if rows8 >= min_blocks * 8:
        tile = min(tile, max(8, _round_up(pl.cdiv(rows8, min_blocks), 8)))
    return max(8, tile)


def _layer_norm_xla(x, scale, shift, eps):
    mean = jnp.mean(x, axis=-1, keepdims=True)
    var = jnp.mean((x - mean) ** 2, axis=-1, keepdims=True)
    return scale * ((x - mean) * jax.lax.rsqrt(var + eps)) + shift


def layer_norm(x, scale, shift, *, eps=1e-5, tile_rows=None, force_pallas=False):
    """LayerNorm over the last axis of x. x: (..., emb_dim)."""
    orig_shape = x.shape
    emb_dim = orig_shape[-1]

    # Lane-sparse last dims (emb_dim not a multiple of 128) lower to masked
    # partial stores — the single biggest measured out_spec penalty — so route
    # those shapes to XLA instead of running the kernel shape as-is.
    if emb_dim % 128 != 0 and not force_pallas:
        return _layer_norm_xla(x, scale, shift, eps)

    rows = 1
    for d in orig_shape[:-1]:
        rows *= d

    x2 = x.reshape(rows, emb_dim)
    scale2 = scale.reshape(1, emb_dim)
    shift2 = shift.reshape(1, emb_dim)

    vmem_cap = _vmem_capacity_bytes()
    itemsize = jnp.dtype(x.dtype).itemsize
    if tile_rows is None:
        tile_rows = _pick_tile_rows(rows, emb_dim, itemsize, vmem_cap,
                                    _num_tensorcores())

    grid = (pl.cdiv(rows, tile_rows),)
    # Scoped-VMEM limit: the tile selection keeps the double-buffered blocks
    # plus f32 temporaries under vmem_cap // 2, so 3/4 of capacity leaves
    # comfortable headroom on every generation (48 MiB on v7x, 96 MiB on
    # v5e/v6e).
    vmem_limit = min((vmem_cap * 3) // 4, 128 * 1024 * 1024)

    kernel = functools.partial(_layernorm_kernel, eps=eps)

    out = pl.pallas_call(
        kernel,
        out_shape=jax.ShapeDtypeStruct((rows, emb_dim), x.dtype),
        grid_spec=pltpu.PrefetchScalarGridSpec(
            num_scalar_prefetch=0,
            grid=grid,
            in_specs=[
                pl.BlockSpec((tile_rows, emb_dim), lambda i: (i, 0)),
                pl.BlockSpec((1, emb_dim), lambda i: (0, 0)),
                pl.BlockSpec((1, emb_dim), lambda i: (0, 0)),
            ],
            out_specs=pl.BlockSpec((tile_rows, emb_dim), lambda i: (i, 0)),
        ),
        compiler_params=pltpu.CompilerParams(
            dimension_semantics=("parallel",),
            vmem_limit_bytes=int(vmem_limit),
        ),
    )(x2, scale2, shift2)

    return out.reshape(orig_shape)


def _reference(x, scale, shift, eps=1e-5):
    mean = jnp.mean(x, axis=-1, keepdims=True)
    var = jnp.mean((x - mean) ** 2, axis=-1, keepdims=True)
    return scale * ((x - mean) / jnp.sqrt(var + eps)) + shift


if __name__ == "__main__":
    key = jax.random.PRNGKey(0)
    k1, k2, k3, k4, k5 = jax.random.split(key, 5)

    # Small demo shape consistent with the module: (batch, seq, emb_dim),
    # emb_dim kept lane-dense (multiple of 128) so the Pallas path runs.
    batch, seq, emb_dim = 2, 8, 128
    x = jax.random.normal(k1, (batch, seq, emb_dim), dtype=jnp.float32)
    # Parameters as initialized by the module: ones / zeros of size emb_dim.
    scale = jnp.ones((emb_dim,), dtype=jnp.float32)
    shift = jnp.zeros((emb_dim,), dtype=jnp.float32)

    out = jax.block_until_ready(layer_norm(x, scale, shift))
    ref = _reference(x, scale, shift)
    assert out.shape == x.shape
    assert jnp.allclose(out, ref, atol=1e-4, rtol=1e-5)

    # Larger lane-dense shape: exercises the byte-based tile selection + grid.
    x2 = jax.random.normal(k2, (2, 256, 256), dtype=jnp.float32)
    scale2 = jax.random.normal(k3, (256,), dtype=jnp.float32)
    shift2 = jax.random.normal(k4, (256,), dtype=jnp.float32)
    out2 = jax.block_until_ready(layer_norm(x2, scale2, shift2))
    ref2 = _reference(x2, scale2, shift2)
    assert jnp.allclose(out2, ref2, atol=1e-4, rtol=1e-4)

    # Non-lane-dense emb_dim: routed to the XLA fallback (still correct).
    x3 = jax.random.normal(k5, (2, 8, 32), dtype=jnp.float32)
    scale3 = jnp.ones((32,), dtype=jnp.float32)
    shift3 = jnp.zeros((32,), dtype=jnp.float32)
    out3 = jax.block_until_ready(layer_norm(x3, scale3, shift3))
    ref3 = _reference(x3, scale3, shift3)
    assert jnp.allclose(out3, ref3, atol=1e-4, rtol=1e-5)

    print("KERNEL_OK")
</pallas_src>

<mosaic_0001>
module attributes {stable_mosaic.version = 11 : i64} {
  func.func @_layernorm_kernel(%arg0: i32, %arg1: memref<8x128xf32, #tpu.memory_space<vmem>>, %arg2: memref<1x128xf32, #tpu.memory_space<vmem>>, %arg3: memref<1x128xf32, #tpu.memory_space<vmem>>, %arg4: memref<8x128xf32, #tpu.memory_space<vmem>>) attributes {dimension_semantics = [#tpu.dimension_semantics<parallel>], iteration_bounds = array<i64: 2>, scalar_prefetch = 0 : i64, scratch_operands = 0 : i64, tpu.core_type = #tpu.core_type<tc>, window_params = [{transform_indices = @transform_0, window_bounds = array<i64: 8, 128>}, {pipeline_mode = #tpu.pipeline_mode<synchronous>, transform_indices = @transform_1, window_bounds = array<i64: 1, 128>}, {pipeline_mode = #tpu.pipeline_mode<synchronous>, transform_indices = @transform_2, window_bounds = array<i64: 1, 128>}, {transform_indices = @transform_3, window_bounds = array<i64: 8, 128>}]} {
    %c0 = arith.constant 0 : index
    %c0_0 = arith.constant 0 : index
    %0 = vector.load %arg1[%c0, %c0_0] : memref<8x128xf32, #tpu.memory_space<vmem>>, vector<8x128xf32>
    %cst = arith.constant dense<0.000000e+00> : vector<8xf32>
    %1 = vector.multi_reduction <add>, %0, %cst [1] : vector<8x128xf32> to vector<8xf32>
    %2 = vector.shape_cast %1 : vector<8xf32> to vector<8x1xf32>
    %cst_1 = arith.constant 7.812500e-03 : f32
    %3 = vector.broadcast %cst_1 : f32 to vector<8x1xf32>
    %4 = arith.mulf %2, %3 : vector<8x1xf32>
    %5 = vector.broadcast %4 : vector<8x1xf32> to vector<8x128xf32>
    %6 = arith.subf %0, %5 : vector<8x128xf32>
    %7 = arith.mulf %6, %6 : vector<8x128xf32>
    %cst_2 = arith.constant dense<0.000000e+00> : vector<8xf32>
    %8 = vector.multi_reduction <add>, %7, %cst_2 [1] : vector<8x128xf32> to vector<8xf32>
    %9 = vector.shape_cast %8 : vector<8xf32> to vector<8x1xf32>
    %cst_3 = arith.constant 7.812500e-03 : f32
    %10 = vector.broadcast %cst_3 : f32 to vector<8x1xf32>
    %11 = arith.mulf %9, %10 : vector<8x1xf32>
    %cst_4 = arith.constant 9.99999974E-6 : f32
    %12 = vector.broadcast %cst_4 : f32 to vector<8x1xf32>
    %13 = arith.addf %11, %12 : vector<8x1xf32>
    %14 = math.rsqrt %13 : vector<8x1xf32>
    %c0_5 = arith.constant 0 : index
    %c0_6 = arith.constant 0 : index
    %15 = vector.load %arg2[%c0_5, %c0_6] : memref<1x128xf32, #tpu.memory_space<vmem>>, vector<1x128xf32>
    %c0_7 = arith.constant 0 : index
    %c0_8 = arith.constant 0 : index
    %16 = vector.load %arg3[%c0_7, %c0_8] : memref<1x128xf32, #tpu.memory_space<vmem>>, vector<1x128xf32>
    %17 = vector.broadcast %14 : vector<8x1xf32> to vector<8x128xf32>
    %18 = arith.mulf %6, %17 : vector<8x128xf32>
    %19 = vector.broadcast %15 : vector<1x128xf32> to vector<8x128xf32>
    %20 = arith.mulf %18, %19 : vector<8x128xf32>
    %21 = vector.broadcast %16 : vector<1x128xf32> to vector<8x128xf32>
    %22 = arith.addf %20, %21 : vector<8x128xf32>
    %c0_9 = arith.constant 0 : index
    %c0_10 = arith.constant 0 : index
    %23 = vector.load %arg4[%c0_9, %c0_10] : memref<8x128xf32, #tpu.memory_space<vmem>>, vector<8x128xf32>
    tpu.vector_store %arg4[%c0_9, %c0_10], %22 {strides = array<i32>} : memref<8x128xf32, #tpu.memory_space<vmem>>, vector<8x128xf32>,
    return
  }
  func.func @transform_0(%arg0: i32) -> (i32, i32) {
    %c0_i32 = arith.constant 0 : i32
    %c0_i32_0 = arith.constant 0 : i32
    return %arg0, %c0_i32 : i32, i32
  }
  func.func @transform_1(%arg0: i32) -> (i32, i32) {
    %c0_i32 = arith.constant 0 : i32
    %c0_i32_0 = arith.constant 0 : i32
    %c0_i32_1 = arith.constant 0 : i32
    return %c0_i32, %c0_i32_0 : i32, i32
  }
  func.func @transform_2(%arg0: i32) -> (i32, i32) {
    %c0_i32 = arith.constant 0 : i32
    %c0_i32_0 = arith.constant 0 : i32
    %c0_i32_1 = arith.constant 0 : i32
    return %c0_i32, %c0_i32_0 : i32, i32
  }
  func.func @transform_3(%arg0: i32) -> (i32, i32) {
    %c0_i32 = arith.constant 0 : i32
    %c0_i32_0 = arith.constant 0 : i32
    return %arg0, %c0_i32 : i32, i32
  }
}

</mosaic_0001>

<bundles_post_ra>
// kernel: tpu_custom_call.1
= control target key start
LH: loop header
LB: loop body
LE: loop exit
PB: predicated region body
PF: predicated region fallthrough
CT: control target
= control target key end

     0   :  { %8 = vsyncpa [#allocation3], 0  ;;  %s704_s0 = inlined_call_operand.hbm [shape: f32[16,128], index: 0, kind: input, shape index: {}]   ;;  %s705_s1 = inlined_call_operand.hbm [shape: f32[1,128], index: 1, kind: input, shape index: {}]   ;;  %s706_s2 = inlined_call_operand.vmem [shape: f32[1,128], index: 2, kind: input, shape index: {}]   ;;  %s707_s3 = inlined_call_operand.hbm [shape: f32[16,128], index: 3, kind: output, shape index: {}]  }
   0x1   :  { %10 = vsyncpa [#allocation3 + $0x1], 0 }
   0x2   :  { %11 = vsyncpa [#allocation6], 0 }
   0x3   :  { %12 = vsyncpa [#allocation4], 0 }
   0x4   :  { %14 = vsyncpa [#allocation4 + $0x1], 0  ;;  %s559_s12 = smov 0   ;;  %s561_s13 = smov 0  }
   0x5   :  { %s563_s14 = smov 0   ;;  %s565_s15 = smov 0  }
   0x6 LB: > { %s580_s16 = sadd.s32 4294967295, %s536_s15   ;;  %s331_s17 = sadd.s32 4294967294, %s536_s15   ;;  %s536_s15 = sphi %s565_s15, %s717_s15   ;;  %s532_s14 = sphi %s563_s14, %s716_s14   ;;  %s528_s13 = sphi %s561_s13, %s715_s13   ;;  %s524_s12 = sphi %s559_s12, %s714_s12  }
   0x7   : > { %p40_p0 = scmp.ne.s32.totalorder %s528_s13, %s524_s12  ;;  %p41_p1 = scmp.eq.s32.totalorder %s580_s16, 0 }
   0x8   : > { %p106_p2 = scmp.eq.s32.totalorder %s580_s16, 1  ;;  %p112_p3 = scmp.eq.s32.totalorder %s331_s17, 1 }
   0x9   : > { %p589_p4 = por %p41_p1, %p40_p0  ;;  %p332_p5 = scmp.ge.s32.totalorder %s536_s15, 1 }
   0xa   : > { %p594_p6 = por %p112_p3, %p40_p0  ;;  %p119_p7 = scmp.lt.s32.totalorder %s536_s15, 3 }
   0xb   : > { %s131_s22 = sshll.u32 %s705_s1, 4  ;;  %s538_s24 = smov [#allocation5]   ;;  %s132_s22 = int_to_ptr.hbm [resolvable:$true] %s131_s22 }
   0xc   : > { %p602_p8 = pnand %p332_p5, %p119_p7  ;;  %s133_s25 = sshll.u32 %s538_s24, 4  ;;  %s134_s25 = int_to_ptr.vmem [resolvable:$true] %s133_s25 }
   0xd   : > { %s612_s26 = sadd.s32 1, %s536_s15   ;;  %s27_s27 = sadd.s32 1, %s532_s14 }
   0xe   : > { %p353_p10 = pneg %p602_p8  ;;  %s24_s28 = ssub.s32 %s536_s15, %s612_s26 }
   0xf   : > { %p25_p12 = scmp.eq.s32.totalorder %s24_s28, 0  ;;  %p34_p13 = scmp.ne.s32.totalorder %s532_s14, %s528_s13 }
  0x10   : > { %p354_p11 = pnand %p353_p10, %p41_p1  ;;  %p35_p0 = scmp.eq.s32.totalorder %s536_s15, 0 }
  0x11   : > { %s621_s29 = scalar_select %p25_p12, %s532_s14, %s27_s27  }
  0x12   : > { %356 = dma.hbm_to_vmem [thread:$0]  (!%p354_p11), %s132_s22, 16, %s134_s25, [#allocation6]  }
  0x13   : > { %p625_p3 = por %p106_p2, %p34_p13  ;;  %p366_p5 = scmp.lt.s32.totalorder %s536_s15, 2 }
  0x14   : > { %s147_s4 = sand.u32 1, %s532_s14   ;;  %s336_s5 = sshll.u32 %s536_s15, 3 }
  0x15   : > { %p36_p7 = por %p35_p0, %p34_p13  ;;  %s335_s6 = sshll.u32 %s147_s4, 3 }
  0x16   : > { %s155_s9 = scalar_lea.hbm %s704_s0, %s336_s5  ;;  %s151_s11 = scalar_lea.vmem [#allocation2], %s335_s6 }
  0x17   : > { %s157_s10 = sshll.u32 %s155_s9, 4  ;;  %s159_s17 = sshll.u32 %s151_s11, 4  ;;  %s158_s10 = int_to_ptr.hbm [resolvable:$true] %s157_s10  ;;  %s160_s17 = int_to_ptr.vmem [resolvable:$true] %s159_s17 }
  0x18   : > { %p635_p10 = pnand %p366_p5, %p36_p7  ;;  %s148_s21 = scalar_lea.sflag [#allocation3], %s147_s4 }
  0x19   : > { %s436_s22 = sshra.s32 %s158_s10, 4  ;;  %s443_s28 = scalar_lea.hbm %s704_s0, 16  ;;  %s437_s22 = int_to_ptr.hbm [resolvable:$true] %s436_s22 }
  0x1a   : > { %s438_s24 = scalar_lea.hbm %s437_s22, 8  ;;  %p440_p11 = pneg %p635_p10 }
  0x1b   : > { %p439_p2 = scmp.ne.s32.totalorder %s437_s22, %s438_s24  ;;  %p444_p0 = scmp.lt.s32.totalorder %s437_s22, %s704_s0 }
  0x1c   : > { %p445_p5 = scmp.lt.s32.totalorder %s443_s28, %s438_s24 }
  0x1d   : > { %p441_p12 = pnand %p440_p11, %p439_p2 }
  0x1e   : > { %p446_p7 = por %p445_p5, %p444_p0 }
  0x1f   : > { %p442_p13 = pneg %p441_p12 }
  0x21   : > { %p447_p9 = pnand %p446_p7, %p442_p13 }
  0x23   : > { %450 = shalt.err (!%p447_p9)
}
  0x24   : > { %360 = dma.hbm_to_vmem [thread:$0]  (!%p635_p10), %s158_s10, 128, %s160_s17, %s148_s21  }
  0x25   : > { %168 = sbr.rel (%p602_p8) target bundleno = 315 (0x13b), region = 32  ;;  %s652_s4 = sand.u32 (!%p602_p8), 1, %s528_s13  }
  0x26   : > { %s338_s7 = sshll.u32 (!%p602_p8), %s652_s4, 3  ;;  %s171_s8 = scalar_lea.sflag (!%p602_p8), [#allocation3], %s652_s4 }
  0x27   : > { %s174_s9 = scalar_lea.vmem (!%p602_p8), [#allocation2], %s338_s7 }
  0x2a   : > { %511 = dma.done.wait (%p589_p4), %s171_s8, 128  }
  0x2b   : > { %513 = vsyncadd (%p589_p4), %s171_s8, 4294967168 }
  0x2c   : > { %515 = dma.done.wait (%p41_p1), [#allocation6], 16  }
  0x2d   : > { %517 = vsyncadd (%p41_p1), [#allocation6], 4294967280  ;;  %v203_v0 = vld [vmem:[%s174_s9] sm:$0xff]  ;;  %s342_s18 = sshll.u32 %s580_s16, 3  ;;  %v402_v14 = vld [vmem:[#allocation5] ss:$0 sm:$0xff] }
  0x2e   : > { %204 = vadd.xlane.f32.xlu0 %v203_v0  ;;  %s246_s11 = scalar_lea.hbm %s707_s3, %s342_s18  ;;  %v403_v17 = vld [vmem:[%s706_s2] ss:$0 sm:$0xff]  ;;  %s202_s21 = scalar_lea.vmem [#allocation7], %s338_s7 }
  0x2f   : > { %s248_s22 = sshll.u32 %s202_s21, 4  ;;  %s250_s16 = sshll.u32 %s246_s11, 4  ;;  %s249_s22 = int_to_ptr.vmem [resolvable:$true] %s248_s22  ;;  %s251_s16 = int_to_ptr.hbm [resolvable:$true] %s250_s16 }
  0x30   : > { %s236_s24 = scalar_lea.sflag [#allocation4], %s652_s4  ;;  %s480_s25 = sshra.s32 %s251_s16, 4  ;;  %s481_s25 = int_to_ptr.hbm [resolvable:$true] %s480_s25 }
  0x31   : > { %s482_s27 = scalar_lea.hbm %s481_s25, 8  ;;  %s486_s6 = scalar_lea.hbm %s707_s3, 16 }
  0x32   : > { %p483_p1 = scmp.ne.s32.totalorder %s481_s25, %s482_s27  ;;  %p487_p9 = scmp.lt.s32.totalorder %s481_s25, %s707_s3 }
  0x33   : > { %p488_p10 = scmp.lt.s32.totalorder %s486_s6, %s482_s27 }
  0x34   : > { %p484_p4 = pnand %p483_p1, %p625_p3 }
  0x35   : > { %p489_p2 = por %p488_p10, %p487_p9 }
  0x36   : > { %p485_p8 = pneg %p484_p4 }
  0x38   : > { %p490_p11 = pnand %p489_p2, %p485_p8 }
  0xa1   : > { %v205_v1 = vpop.xlane.xlu0 %204 }
  0xa2   : > { %v206_v2 = vmul.f32 0.0078125, %v205_v1 }
  0xa4   : > { %v207_v3 = vsub.f32 %v203_v0, %v206_v2 }
  0xa6   : > { %v208_v4 = vmul.f32 %v207_v3, %v207_v3 }
  0xa8   : > { %209 = vadd.xlane.f32.xlu0 %v208_v4 }
 0x11b   : > { %v210_v5 = vpop.xlane.xlu0 %209 }
 0x11c   : > { %v211_v6 = vmul.f32 0.0078125, %v210_v5 }
 0x11e   : > { %v212_v7 = vadd.f32 1e-05, %v211_v6 }
 0x120   : > { %404 = vrsqrt.f32 %v212_v7  ;;  %vm219_vm1 = vweird.f32 %v212_v7 }
 0x126   : > { %v405_v8 = vpop.eup %404 }
 0x127   : > { %v214_v9 = vmul.f32 %v405_v8, %v212_v7  ;;  %vm220_vm0 = vweird.f32 %v405_v8 }
 0x128   : > { %vm221_vm2 = vmor %vm219_vm1, %vm220_vm0 }
 0x129   : > { %v215_v10 = vmul.f32 %v405_v8, %v214_v9 }
 0x12b   : > { %v216_v11 = vmul.f32 0.5, %v215_v10 }
 0x12d   : > { %v217_v12 = vsub.f32 1.5, %v216_v11 }
 0x12f   : > { %v218_v13 = vmul.f32 %v405_v8, %v217_v12 }
 0x131   : > { %v222_v15 = vsel %vm221_vm2, %v405_v8, %v218_v13 }
 0x132   : > { %v225_v16 = vmul.f32 %v222_v15, %v207_v3 }
 0x134   : > { %v229_v18 = vmul.f32 %v402_v14, %v225_v16 }
 0x136   : > { %v233_v19 = vadd.f32 %v403_v17, %v229_v18 }
 0x138   : > { %234 = vst [vmem:[%s202_s21] sm:$0xff] %v233_v19 }
 0x139   : > { %493 = shalt.err (!%p490_p11)
}
 0x13a   : > { %351 = dma.vmem_to_hbm [thread:$0]  (%p625_p3), %s249_s22, 128, %s251_s16, %s236_s24  }
 0x13b PF: > { %s262_s4 = sand.u32 1, %s524_s12   ;;  %p713_p12 = scmp.ge.s32.totalorder %s536_s15, 2 }
 0x13c   : > { %s263_s9 = scalar_lea.sflag [#allocation4], %s262_s4 }
 0x13d   : > { %p362_p13 = pnand %p713_p12, %p594_p6 }
 0x13f   : > { %p363_p0 = pneg %p362_p13 }
 0x141   : > { %519 = dma.done.wait (%p363_p0), %s263_s9, 128  }
 0x142   : > { %521 = vsyncadd (%p363_p0), %s263_s9, 4294967168  ;;  %p17_p5 = scmp.ge.s32.totalorder %s612_s26, 4   ;;  %s714_s12 = smov %s528_s13 }
 0x143   : > { %s715_s13 = smov %s532_s14  ;;  %s716_s14 = smov %s621_s29 }
 0x144   : > { %s717_s15 = smov %s612_s26  ;;  %19 = sbr.rel (!%p17_p5) target bundleno = 6 (0x6), region = 81 }
 0x149   :  { %269 = vsyncpa [#allocation3], 1 }
 0x14a   :  { %271 = vsyncpa [#allocation3 + $0x1], 1 }
 0x14b   :  { %272 = vsyncpa [#allocation6], 1 }
 0x14c   :  { %273 = vsyncpa [#allocation4], 1 }
 0x14d   :  { %275 = vsyncpa [#allocation4 + $0x1], 1 }

</bundles_post_ra>
